<compile_context>
chip_gen: v7x
topology: tpu7x:2x2x1
jax: 0.10.0
libtpu: 0.0.40
codegen_flags: <defaults>
</compile_context>

<pallas_src>
import functools

import jax
import jax.numpy as jnp
from jax.experimental import pallas as pl
from jax.experimental.pallas import tpu as pltpu


# ----------------------------------------------------------------------------
# Kernel
# ----------------------------------------------------------------------------
def mlp_kernel(x_ref, wg_ref, w3_ref, o_ref, acc_ref, *, th):
    """Grid = (M tiles [parallel], H tiles [arbitrary / reduction]).

    Per step: one fused gate matmul (x @ [W1^T | W2^T] tile) -> f32 silu gate
    -> one accumulated down-projection matmul into an f32 VMEM scratch.
    """
    h = pl.program_id(1)

    @pl.when(h == 0)
    def _init():
        acc_ref[...] = jnp.zeros_like(acc_ref)

    x = x_ref[...]                                             # (tm, E) bf16 (cast in wrapper)
    wg = wg_ref[...]                                           # (E, 2*th) fused [W1^T | W2^T]
    g12 = jnp.dot(x, wg, preferred_element_type=jnp.float32)   # (tm, 2*th) f32 accum
    h1 = g12[:, :th]
    h2 = g12[:, th:]
    g = (h1 * jax.nn.sigmoid(h1)) * h2                         # silu * gate in f32 (VPU/EUP)
    acc_ref[...] += jnp.dot(g.astype(x.dtype), w3_ref[...],
                            preferred_element_type=jnp.float32)  # (tm, E) f32 accum

    @pl.when(h == pl.num_programs(1) - 1)
    def _finalize():
        o_ref[...] = acc_ref[...].astype(o_ref.dtype)


# ----------------------------------------------------------------------------
# Per-generation tiling policy
# ----------------------------------------------------------------------------
def _device_kind():
    try:
        return jax.devices()[0].device_kind.lower()
    except Exception:  # pragma: no cover - defensive
        return ""


def _tile_policy():
    """Returns (tm, vmem_limit_bytes) defaults for the local TPU generation."""
    kind = _device_kind()
    try:
        vmem_cap = int(pltpu.get_tpu_info().vmem_capacity_bytes)
    except Exception:
        vmem_cap = None

    if "v5 lite" in kind or "v5e" in kind or "v5lite" in kind:
        tm = 256                       # v5e: ridge ~240 FLOP/byte -> already compute-bound
        cap = vmem_cap or (128 << 20)
    elif "v6" in kind:
        tm = 768                       # v6e: ridge ~650 FLOP/byte -> need big M tile
        cap = vmem_cap or (128 << 20)
    elif "v7" in kind or "7x" in kind:
        tm = 512                       # v7x: ridge ~310 FLOP/byte, only 64 MiB VMEM
        cap = vmem_cap or (64 << 20)
    else:
        tm = 256                       # conservative fallback
        cap = vmem_cap or (64 << 20)

    vmem_limit = int(0.75 * cap)
    vmem_limit = max(32 << 20, min(vmem_limit, 100 << 20))
    return tm, vmem_limit


def default_hidden_tile():
    """Smaller hidden tile on v7x (halved physical VMEM); 512 elsewhere."""
    kind = _device_kind()
    return 256 if ("v7" in kind or "7x" in kind) else 512


# ----------------------------------------------------------------------------
# One-time weight re-layout (parameter-load time, NOT per forward call)
# ----------------------------------------------------------------------------
def _best_hidden_tile(H, th_req):
    """Largest divisor of H that is a multiple of 128 and <= th_req;
    otherwise the largest divisor of H <= th_req (at least 1)."""
    th_req = max(1, min(int(th_req), int(H)))
    best_any, best_128 = 1, 0
    for d in range(1, th_req + 1):
        if H % d == 0:
            best_any = d
            if d % 128 == 0:
                best_128 = d
    return best_128 or best_any


def prepare_weights(w1, w2, w3, *, th=None, param_dtype=jnp.bfloat16):
    """Returns:
      wg  : (H//th, E, 2*th) -- hidden-tile j holds [W1^T tile j | W2^T tile j]
      w3t : (H, E)
      th  : the effective hidden tile actually used
    """
    H, E = w1.shape
    th_req = default_hidden_tile() if th is None else th
    th_eff = _best_hidden_tile(H, th_req)
    nh = H // th_eff
    w1b = w1.T.reshape(E, nh, th_eff).transpose(1, 0, 2)            # (nh, E, th)
    w2b = w2.T.reshape(E, nh, th_eff).transpose(1, 0, 2)            # (nh, E, th)
    wg = jnp.concatenate([w1b, w2b], axis=-1).astype(param_dtype)   # (nh, E, 2*th)
    w3t = w3.T.astype(param_dtype)                                  # (H, E)
    return wg, w3t, th_eff


# ----------------------------------------------------------------------------
# Forward
# ----------------------------------------------------------------------------
def mlp_forward(x, wg, w3t, *, th, tm=None, vmem_limit_bytes=None,
                compute_dtype=jnp.bfloat16):
    if tm is None or vmem_limit_bytes is None:
        ptm, pvmem = _tile_policy()
        tm = ptm if tm is None else tm
        vmem_limit_bytes = pvmem if vmem_limit_bytes is None else vmem_limit_bytes
    return _mlp_forward(x, wg, w3t, th=th, tm=tm,
                        vmem_limit_bytes=vmem_limit_bytes,
                        compute_dtype=compute_dtype)


@functools.partial(
    jax.jit, static_argnames=("th", "tm", "vmem_limit_bytes", "compute_dtype"))
def _mlp_forward(x, wg, w3t, *, th, tm, vmem_limit_bytes, compute_dtype):
    """x: (B, S, E);  wg: (H//th, E, 2*th);  w3t: (H, E)  ->  (B, S, E)."""
    B, S, E = x.shape
    nh, e_w, twoth = wg.shape
    assert e_w == E and twoth == 2 * th
    H = nh * th
    assert w3t.shape == (H, E)

    M = B * S
    out_dtype = x.dtype
    x2d = x.reshape(M, E).astype(compute_dtype)     # cast ONCE in the wrapper

    # bf16 sublane packing -> round the M tile / padding to multiples of 16.
    sub = 16 if jnp.dtype(compute_dtype).itemsize == 2 else 8
    tm_eff = min(tm, pl.cdiv(M, sub) * sub)
    m_pad = pl.cdiv(M, tm_eff) * tm_eff
    if m_pad != M:
        x2d = jnp.pad(x2d, ((0, m_pad - M), (0, 0)))

    grid_m = m_pad // tm_eff
    grid = (grid_m, nh)   # hidden (accumulation) axis LAST

    # Weights are re-streamed from HBM for every M tile (h axis innermost).
    bytes_accessed = (x2d.size * x2d.dtype.itemsize
                      + grid_m * (wg.size * wg.dtype.itemsize
                                  + w3t.size * w3t.dtype.itemsize)
                      + m_pad * E * jnp.dtype(out_dtype).itemsize)
    cost = pl.CostEstimate(flops=6 * m_pad * E * H,
                           transcendentals=m_pad * H,
                           bytes_accessed=bytes_accessed)

    kernel = functools.partial(mlp_kernel, th=th)

    # NOTE: real configs should keep E a multiple of 128 for lane-dense stores.
    out2d = pl.pallas_call(
        kernel,
        out_shape=jax.ShapeDtypeStruct((m_pad, E), out_dtype),
        grid_spec=pltpu.PrefetchScalarGridSpec(
            num_scalar_prefetch=0,
            grid=grid,
            in_specs=[
                # x tile: block index is constant across the inner h axis.
                pl.BlockSpec((tm_eff, E), lambda i, h: (i, 0)),
                # fused [W1^T | W2^T] hidden tile; Squeezed leading dim -> clean 2-D ref.
                pl.BlockSpec((pl.Squeezed(), E, 2 * th), lambda i, h: (h, 0, 0)),
                # W3^T hidden tile.
                pl.BlockSpec((th, E), lambda i, h: (h, 0)),
            ],
            out_specs=pl.BlockSpec((tm_eff, E), lambda i, h: (i, 0)),
            scratch_shapes=[pltpu.VMEM((tm_eff, E), jnp.float32)],   # f32 accumulator
        ),
        compiler_params=pltpu.CompilerParams(
            # The h axis is a reduction into the accumulator: keep it "arbitrary".
            dimension_semantics=("parallel", "arbitrary"),
            vmem_limit_bytes=vmem_limit_bytes,
        ),
        cost_estimate=cost,
    )(x2d, wg, w3t)

    if m_pad != M:
        out2d = out2d[:M]
    return out2d.reshape(B, S, E)


def reference_mlp(x, w1, w2, w3):
    h1 = jnp.einsum("bse,he->bsh", x, w1)
    h2 = jnp.einsum("bse,he->bsh", x, w2)
    g = jax.nn.silu(h1) * h2
    return jnp.einsum("bsh,eh->bse", g, w3)


if __name__ == "__main__":
    cfg = {"emb_dim": 32, "hidden_dim": 64, "dtype": jnp.float32}
    B, S = 2, 8

    key = jax.random.PRNGKey(0)
    kx, k1, k2, k3 = jax.random.split(key, 4)

    x = jax.random.normal(kx, (B, S, cfg["emb_dim"]), dtype=cfg["dtype"])
    # nn.Linear weight shapes: (out_features, in_features), bias=False
    w1 = jax.random.normal(k1, (cfg["hidden_dim"], cfg["emb_dim"]), dtype=cfg["dtype"]) * 0.05
    w2 = jax.random.normal(k2, (cfg["hidden_dim"], cfg["emb_dim"]), dtype=cfg["dtype"]) * 0.05
    w3 = jax.random.normal(k3, (cfg["emb_dim"], cfg["hidden_dim"]), dtype=cfg["dtype"]) * 0.05

    # One-time weight prep (transpose + fuse + bf16) -- parameter-load time.
    wg, w3t, th_eff = prepare_weights(w1, w2, w3)

    out = mlp_forward(x, wg, w3t, th=th_eff)
    jax.block_until_ready(out)

    ref = reference_mlp(x, w1, w2, w3)
    assert out.shape == (B, S, cfg["emb_dim"])
    # bf16 MXU operands with f32 accumulation -> relaxed tolerance vs f32 ref.
    assert jnp.allclose(out, ref, atol=2e-2, rtol=2e-2), (
        f"max abs err = {jnp.max(jnp.abs(out - ref))}")

    print("KERNEL_OK")
</pallas_src>

<mosaic_0001>
module attributes {stable_mosaic.version = 11 : i64} {
  func.func @mlp_kernel(%arg0: i32, %arg1: i32, %arg2: memref<16x32xbf16, #tpu.memory_space<vmem>>, %arg3: memref<1x32x128xbf16, #tpu.memory_space<vmem>>, %arg4: memref<64x32xbf16, #tpu.memory_space<vmem>>, %arg5: memref<16x32xf32, #tpu.memory_space<vmem>>, %arg6: memref<16x32xf32, #tpu.memory_space<vmem>>) attributes {dimension_semantics = [#tpu.dimension_semantics<parallel>, #tpu.dimension_semantics<arbitrary>], iteration_bounds = array<i64: 1, 1>, scalar_prefetch = 0 : i64, scratch_operands = 1 : i64, tpu.core_type = #tpu.core_type<tc>, window_params = [{transform_indices = @transform_0, window_bounds = array<i64: 16, 32>}, {transform_indices = @transform_1, window_bounds = array<i64: 1, 32, 128>}, {transform_indices = @transform_2, window_bounds = array<i64: 64, 32>}, {transform_indices = @transform_3, window_bounds = array<i64: 16, 32>}]} {
    %c0_i32 = arith.constant 0 : i32
    %0 = arith.cmpi eq, %arg1, %c0_i32 : i32
    %1 = arith.extui %0 : i1 to i32
    %c0_i32_0 = arith.constant 0 : i32
    %2 = arith.cmpi ne, %1, %c0_i32_0 : i32
    scf.if %2 {
      %cst_15 = arith.constant 0.000000e+00 : f32
      %25 = vector.broadcast %cst_15 : f32 to vector<16x32xf32>
      %c0_16 = arith.constant 0 : index
      %c0_17 = arith.constant 0 : index
      %26 = vector.load %arg6[%c0_16, %c0_17] : memref<16x32xf32, #tpu.memory_space<vmem>>, vector<16x32xf32>
      tpu.vector_store %arg6[%c0_16, %c0_17], %25 {strides = array<i32>} : memref<16x32xf32, #tpu.memory_space<vmem>>, vector<16x32xf32>,
    } else {
    }
    %c0 = arith.constant 0 : index
    %c0_1 = arith.constant 0 : index
    %3 = vector.load %arg2[%c0, %c0_1] : memref<16x32xbf16, #tpu.memory_space<vmem>>, vector<16x32xbf16>
    %c0_2 = arith.constant 0 : index
    %c0_3 = arith.constant 0 : index
    %c0_4 = arith.constant 0 : index
    %4 = vector.load %arg3[%c0_2, %c0_3, %c0_4] : memref<1x32x128xbf16, #tpu.memory_space<vmem>>, vector<1x32x128xbf16>
    %5 = vector.shape_cast %4 : vector<1x32x128xbf16> to vector<32x128xbf16>
    %cst = arith.constant dense<0.000000e+00> : vector<16x128xf32>
    %6 = tpu.matmul %3, %5, %cst {dimension_numbers = #tpu.dot_dimension_numbers<[1], [0], [0], [1], [0, 0, 1, 1], [], []>} : vector<16x32xbf16>, vector<32x128xbf16>, vector<16x128xf32> -> vector<16x128xf32>
    %7 = vector.extract_strided_slice %6 {offsets = [0, 0], sizes = [16, 64], strides = [1, 1]} : vector<16x128xf32> to vector<16x64xf32>
    %8 = vector.extract_strided_slice %6 {offsets = [0, 64], sizes = [16, 64], strides = [1, 1]} : vector<16x128xf32> to vector<16x64xf32>
    %9 = arith.negf %7 : vector<16x64xf32>
    %10 = math.exp %9 : vector<16x64xf32>
    %cst_5 = arith.constant 1.000000e+00 : f32
    %11 = vector.broadcast %cst_5 : f32 to vector<16x64xf32>
    %12 = arith.addf %11, %10 : vector<16x64xf32>
    %13 = arith.divf %11, %12 : vector<16x64xf32>
    %14 = arith.mulf %7, %13 : vector<16x64xf32>
    %15 = arith.mulf %14, %8 : vector<16x64xf32>
    %c0_6 = arith.constant 0 : index
    %c0_7 = arith.constant 0 : index
    %16 = vector.load %arg6[%c0_6, %c0_7] : memref<16x32xf32, #tpu.memory_space<vmem>>, vector<16x32xf32>
    %17 = arith.truncf %15 : vector<16x64xf32> to vector<16x64xbf16>
    %c0_8 = arith.constant 0 : index
    %c0_9 = arith.constant 0 : index
    %18 = vector.load %arg4[%c0_8, %c0_9] : memref<64x32xbf16, #tpu.memory_space<vmem>>, vector<64x32xbf16>
    %cst_10 = arith.constant dense<0.000000e+00> : vector<16x32xf32>
    %19 = tpu.matmul %17, %18, %cst_10 {dimension_numbers = #tpu.dot_dimension_numbers<[1], [0], [0], [1], [0, 0, 1, 1], [], []>} : vector<16x64xbf16>, vector<64x32xbf16>, vector<16x32xf32> -> vector<16x32xf32>
    %20 = arith.addf %16, %19 : vector<16x32xf32>
    %c0_11 = arith.constant 0 : index
    %c0_12 = arith.constant 0 : index
    %21 = vector.load %arg6[%c0_11, %c0_12] : memref<16x32xf32, #tpu.memory_space<vmem>>, vector<16x32xf32>
    tpu.vector_store %arg6[%c0_11, %c0_12], %20 {strides = array<i32>} : memref<16x32xf32, #tpu.memory_space<vmem>>, vector<16x32xf32>,
    %c0_i32_13 = arith.constant 0 : i32
    %22 = arith.cmpi eq, %arg1, %c0_i32_13 : i32
    %23 = arith.extui %22 : i1 to i32
    %c0_i32_14 = arith.constant 0 : i32
    %24 = arith.cmpi ne, %23, %c0_i32_14 : i32
    scf.if %24 {
      %c0_15 = arith.constant 0 : index
      %c0_16 = arith.constant 0 : index
      %25 = vector.load %arg6[%c0_15, %c0_16] : memref<16x32xf32, #tpu.memory_space<vmem>>, vector<16x32xf32>
      %c0_17 = arith.constant 0 : index
      %c0_18 = arith.constant 0 : index
      %26 = vector.load %arg5[%c0_17, %c0_18] : memref<16x32xf32, #tpu.memory_space<vmem>>, vector<16x32xf32>
      tpu.vector_store %arg5[%c0_17, %c0_18], %25 {strides = array<i32>} : memref<16x32xf32, #tpu.memory_space<vmem>>, vector<16x32xf32>,
    } else {
    }
    return
  }
  func.func @transform_0(%arg0: i32, %arg1: i32) -> (i32, i32) {
    %c0_i32 = arith.constant 0 : i32
    %c0_i32_0 = arith.constant 0 : i32
    return %arg0, %c0_i32 : i32, i32
  }
  func.func @transform_1(%arg0: i32, %arg1: i32) -> (i32, i32, i32) {
    %c0_i32 = arith.constant 0 : i32
    %c0_i32_0 = arith.constant 0 : i32
    %c0_i32_1 = arith.constant 0 : i32
    return %arg1, %c0_i32, %c0_i32_0 : i32, i32, i32
  }
  func.func @transform_2(%arg0: i32, %arg1: i32) -> (i32, i32) {
    %c0_i32 = arith.constant 0 : i32
    %c0_i32_0 = arith.constant 0 : i32
    return %arg1, %c0_i32 : i32, i32
  }
  func.func @transform_3(%arg0: i32, %arg1: i32) -> (i32, i32) {
    %c0_i32 = arith.constant 0 : i32
    %c0_i32_0 = arith.constant 0 : i32
    return %arg0, %c0_i32 : i32, i32
  }
}

</mosaic_0001>

<bundles_post_ra>
// kernel: _mlp_forward.1
= control target key start
LH: loop header
LB: loop body
LE: loop exit
PB: predicated region body
PF: predicated region fallthrough
CT: control target
= control target key end

     0   :  { %v306_v1 = vmov 0.0   ;;  %vm307_vm0 = vmmov 0   ;;  %vm20_vm1 = vcmask 261120   ;;  %s372_s0 = inlined_call_operand.vmem [shape: bf16[16,32], index: 0, kind: input, shape index: {}]   ;;  %s373_s1 = inlined_call_operand.vmem [shape: bf16[1,32,128], index: 1, kind: input, shape index: {}]   ;;  %s374_s2 = inlined_call_operand.vmem [shape: bf16[64,32], index: 2, kind: input, shape index: {}]   ;;  %s375_s3 = inlined_call_operand.hbm [shape: f32[16,32], index: 3, kind: output, shape index: {}]  }
   0x1   :  { %v267_v0 = vld [vmem:[%s373_s1] sm:$0xff]   ;;  %241 = vmatprep.subr.bf16.mxu0 %v306_v1  ;;  %249 = vmatprep.subr.bf16.mxu1 %v306_v1  ;;  %v268_v2 = vld [vmem:[%s373_s1 + $0x8] sm:$0xff]   ;;  %21 = vst.msk [vmem:[#allocation2] sm:$0xff] %vm20_vm1, %v306_v1  ;;  %22 = vst.msk [vmem:[#allocation2 + $0x8] sm:$0xff] %vm20_vm1, %v306_v1 }
   0x2   :  { %242 = vmatpush3.bf16.msra.mxu0 %v267_v0  ;;  %245 = vmatprep.mubr.msk.bf16.mxu0 %vm307_vm0, %v306_v1  ;;  %v269_v3 = vld [vmem:[%s372_s0] sm:$0xff]  }
   0x3   :  { %243 = vmatprep.subr.bf16.mxu0 %v306_v1  ;;  %257 = vmatprep.mubr.msk.bf16.mxu1 %vm307_vm0, %v306_v1 }
   0x4   :  { %8 = vsyncpa [#allocation4], 0  ;;  %v270_v4 = vld [vmem:[%s374_s2] sm:$0xff]   ;;  %v271_v5 = vld [vmem:[%s374_s2 + $0x8] sm:$0xff]   ;;  %s308_s24 = smov 64   ;;  %vm150_vm2 = vcmask 523264  }
   0x5   :  { %250 = vmatpush3.bf16.msra.mxu1 %v270_v4  ;;  %v272_v6 = vld [vmem:[%s374_s2 + $0x10] sm:$0xff]   ;;  %v273_v7 = vld [vmem:[%s374_s2 + $0x18] sm:$0xff]   ;;  %s309_s2 = smov [#allocation3]  }
   0x6   :  { %244 = vmatpush3.bf16.msra.mxu0 %v268_v2  ;;  %251 = vmatprep.subr.bf16.mxu1 %v306_v1  ;;  %s211_s25 = sshll.u32 %s309_s2, 4  ;;  %s212_s25 = int_to_ptr.vmem [resolvable:$true] %s211_s25 }
   0x7   :  { %s282_s26 = scalar_lea.vmem %s212_s25, 256  ;;  %p287_p1 = scmp.lt.s32.totalorder %s212_s25, %s212_s25 }
   0x8   :  { %v115_v27 = vld [vmem:[#allocation2] sm:$0xff]  ;;  %v116_v29 = vld [vmem:[#allocation2 + $0x8] sm:$0xff]  ;;  %p283_p0 = scmp.ne.s32.totalorder %s212_s25, %s282_s26  ;;  %p288_p2 = scmp.lt.s32.totalorder %s282_s26, %s282_s26 }
   0x9   :  { %246 = vmatmul.mubr.msk.bf16.vlgmr.msra.gmra.mrb[0].mxu0 %vm20_vm1, %v269_v3  ;;  %252 = vmatpush3.bf16.msra.mxu1 %v271_v5 }
   0xa   :  { %253 = vmatprep.subr.bf16.mxu1 %v306_v1  ;;  %p289_p3 = por %p288_p2, %p287_p1 }
   0xc   :  { %p290_p4 = pnand %p289_p3, %p283_p0 }
   0xd   :  { %254 = vmatpush3.bf16.msra.mxu1 %v272_v6 }
   0xe   :  { %255 = vmatprep.subr.bf16.mxu1 %v306_v1 }
  0x11   :  { %256 = vmatpush3.bf16.msra.mxu1 %v273_v7 }
  0xdc   :  { %v84_v8 = vpop.f32.mrb[0].mxu0 }
  0xdd   :  { %107 = vrot.lane.b32.xlu0 %v84_v8, %s308_s24  ;;  %v247_v9 = vpop.f32.mrb[1].mxu0  ;;  %v226_v12 = vmul.f32 -1.442695, %v84_v8 }
  0xde   :  { %v87_v10 = vpop.f32.mrb[2].mxu0 }
  0xdf   :  { %v248_v11 = vpop.f32.mrb[3].mxu0  ;;  %v227_v13 = vmul.f32 -1.442695, %v87_v10  ;;  %274 = vpow2.f32 %v226_v12 }
  0xe1   :  { %109 = vrot.lane.b32.xlu0 %v87_v10, %s308_s24  ;;  %276 = vpow2.f32 %v227_v13 }
  0xe9   :  { %v275_v14 = vpop.eup %274 }
  0xea   :  { %v97_v16 = vadd.f32 1.0, %v275_v14 }
  0xeb   :  { %v277_v15 = vpop.eup %276 }
  0xec   :  { %v98_v17 = vadd.f32 1.0, %v277_v15  ;;  %278 = vrcp.f32 %v97_v16 }
  0xee   :  { %280 = vrcp.f32 %v98_v17 }
  0xf6   :  { %v279_v18 = vpop.eup %278 }
  0xf7   :  { %v103_v21 = vmul.f32 %v279_v18, %v84_v8 }
  0xf8   :  { %v281_v19 = vpop.eup %280 }
  0xf9   :  { %v104_v22 = vmul.f32 %v281_v19, %v87_v10 }
 0x14f   :  { %v108_v20 = vpop.permute.xlu0 %107 }
 0x150   :  { %v113_v24 = vmul.f32 %v108_v20, %v103_v21 }
 0x153   :  { %v110_v23 = vpop.permute.xlu0 %109 }
 0x154   :  { %v114_v25 = vmul.f32 %v110_v23, %v104_v22 }
 0x156   :  { %v117_v26 = vpack.c.bf16 %v114_v25, %v113_v24 }
 0x158   :  { %258 = vmatmul.mubr.msk.bf16.vlgmr.msra.gmra.mrb[0].mxu1 %vm150_vm2, %v117_v26 }
 0x22b   :  { %v188_v28 = vpop.f32.mrb[0].mxu1 }
 0x22c   :  { %v195_v30 = vadd.f32 %v188_v28, %v115_v27  ;;  %v259_v31 = vpop.f32.mrb[1].mxu1 }
 0x22d   :  { %v191_v32 = vpop.f32.mrb[2].mxu1 }
 0x22e   :  { %197 = vst.msk [vmem:[#allocation2] sm:$0xff] %vm20_vm1, %v195_v30  ;;  %v196_v33 = vadd.f32 %v191_v32, %v116_v29  ;;  %v260_v34 = vpop.f32.mrb[3].mxu1 }
 0x230   :  { %198 = vst.msk [vmem:[#allocation2 + $0x8] sm:$0xff] %vm20_vm1, %v196_v33 }
 0x235   :  { %v202_v35 = vld [vmem:[#allocation2] sm:$0xff] }
 0x236   :  { %204 = vst.msk [vmem:[#allocation3] sm:$0xff] %vm20_vm1, %v202_v35 }
 0x237   :  { %v203_v36 = vld [vmem:[#allocation2 + $0x8] sm:$0xff] }
 0x238   :  { %205 = vst.msk [vmem:[#allocation3 + $0x8] sm:$0xff] %vm20_vm1, %v203_v36 }
 0x239   :  { %293 = shalt.err (!%p290_p4)
}
 0x23a   :  { %s294_s29 = scalar_lea.hbm %s375_s3, 256 }
 0x23b   :  { %p295_p5 = scmp.ne.s32.totalorder %s375_s3, %s294_s29  ;;  %p298_p6 = scmp.lt.u32.totalorder %s294_s29, %s375_s3 }
 0x23d   :  { %p300_p7 = pnand %p298_p6, %p295_p5 }
 0x23f   :  { %303 = shalt.err (!%p300_p7)
}
 0x240   :  { %s310_s7 = smov 128   ;;  %s311_s8 = smov 8  }
 0x241   :  { %217 = dma.vmem_to_hbm [thread:$0]  %s212_s25, 256, %s375_s3, [#allocation4], %s310_s7, %s310_s7, %s311_s8  }
 0x242   :  { %304 = dma.done.wait [#allocation4], 256  }
 0x243   :  { %305 = vsyncadd [#allocation4], 4294967040 }
 0x244   :  { %221 = vsyncpa [#allocation4], 1 }

</bundles_post_ra>
